<compile_context>
chip_gen: v6e
topology: v6e:2x2x1
jax: 0.10.0
libtpu: 0.0.40
codegen_flags: <defaults>
</compile_context>

<pallas_src>
import jax
import jax.numpy as jnp
from jax.experimental import pallas as pl
from jax.experimental.pallas import tpu as pltpu

BN_EPS = 1e-5
LANE = 128
SUBLANE = 8
TOKEN_TILE = 512                        # base token tile (rows); balanced per shape
VMEM_TILE_BUDGET = 40 * 1024 * 1024     # keep footprint v7x-safe (64 MiB / TC)


def _cdiv(a, b):
    return -(-a // b)


def _round_up(v, m):
    return _cdiv(v, m) * m


def mixer_kernel(x_ref, ss_ref, w1_ref, b1_ref, w2_ref, b2_ref, o_ref):
    """One (batch, token-tile) step: fused CBN affine + channel MLP + residual.

    x_ref:  [tn, Cp]  f32   token tile (rows of one batch element)
    ss_ref: [2, Cp]   f32   row 0 = fused CBN scale, row 1 = fused CBN shift
    w1_ref: [Cp, Hp]  bf16  resident (constant index map, single-buffered)
    b1_ref: [1, Hp]   bf16  resident
    w2_ref: [Hp, Cp]  bf16  resident
    b2_ref: [1, Cp]   f32   resident
    o_ref:  [tn, Cp]  f32
    """
    x = x_ref[...]                                  # [tn, Cp]
    scale = ss_ref[0:1, :]                          # [1, Cp]  (broadcast over rows)
    shift = ss_ref[1:2, :]                          # [1, Cp]
    h = x * scale + shift                           # conditional BN (stats folded)

    h1 = jnp.dot(h.astype(jnp.bfloat16), w1_ref[...],
                 preferred_element_type=jnp.float32)
    # bias + GELU in bf16, feeding the second MXU dot directly.
    # TODO(synk): PyTorch nn.GELU defaults to the erf form; tanh approx ~1e-3 off.
    h1 = jax.nn.gelu(h1.astype(jnp.bfloat16) + b1_ref[...], approximate=True)
    h2 = jnp.dot(h1, w2_ref[...], preferred_element_type=jnp.float32) + b2_ref[...]

    o_ref[...] = x + h2                             # residual


def _vmem_footprint(tn, cp, hp):
    weights = 2 * cp * hp * 2                       # w1 + w2 bf16, single-buffered
    biases = hp * 2 + cp * 4                        # b1 bf16 + b2 f32, single-buffered
    ss = 2 * (2 * cp * 4)                           # [2, Cp] f32, double-buffered
    xio = 2 * 2 * tn * cp * 4                       # x + out tiles, double-buffered
    inter = tn * hp * (4 + 2) + 2 * tn * cp * 4     # h1 f32+bf16, h / residual temps
    return weights + biases + ss + xio + inter


def mlp_layer_block(x, label, prepared):
    """x: [B, N, C] float32, label: [B] int32 -> [B, N, C] float32."""
    B, N, C = x.shape
    Cp, Hp = prepared["w1"].shape                   # already lane-padded

    # --- conditional BN: ONE-pass batch stats folded into per-sample scale/shift
    n_elems = B * N
    s1 = jnp.sum(x, axis=(0, 1))                    # [C]
    s2 = jnp.sum(jnp.square(x), axis=(0, 1))        # [C]  (fused with s1 by XLA)
    mean = s1 / n_elems
    var = jnp.maximum(s2 / n_elems - jnp.square(mean), 0.0)   # biased (training BN)
    inv_std = jax.lax.rsqrt(var + BN_EPS)
    if Cp > C:
        mean = jnp.pad(mean, (0, Cp - C))
        inv_std = jnp.pad(inv_std, (0, Cp - C))
    gamma = prepared["gamma_emb"][label]            # [B, Cp]
    beta = prepared["beta_emb"][label]              # [B, Cp]
    scale = gamma * inv_std                         # [B, Cp]
    shift = beta - mean * scale                     # [B, Cp]
    ss = jnp.stack([scale, shift], axis=1)          # [B, 2, Cp]

    # --- balanced token tiling ------------------------------------------------
    NT = _cdiv(N, TOKEN_TILE)
    tn = _round_up(_cdiv(N, NT), SUBLANE)
    if B * _cdiv(N, tn) < 2 and N > SUBLANE:        # keep >=2 programs (v7x has 2 TCs)
        tn = _round_up(_cdiv(N, 2), SUBLANE)
    while tn > SUBLANE and _vmem_footprint(tn, Cp, Hp) > VMEM_TILE_BUDGET:
        tn = max(SUBLANE, _round_up(tn // 2, SUBLANE))
    NT = _cdiv(N, tn)
    Np = NT * tn

    # --- pad activations only when genuinely misaligned ------------------------
    needs_pad = (Cp > C) or (Np > N)
    x_in = jnp.pad(x, ((0, 0), (0, Np - N), (0, Cp - C))) if needs_pad else x
    # NOTE: in the aligned (no-pad) path, callers should donate x
    # (jax.jit donate_argnums) and flip the alias below to stay copy-free.

    M = B * Np
    cost = pl.CostEstimate(
        flops=4 * M * Cp * Hp,
        transcendentals=M * Hp,
        bytes_accessed=(2 * M * Cp * 4              # x in + out
                        + 2 * Cp * Hp * 2           # bf16 weights
                        + Hp * 2 + Cp * 4           # biases
                        + B * 2 * Cp * 4),          # fused scale/shift
    )
    vmem_limit = min(96 * 1024 * 1024,
                     max(4 * 1024 * 1024, int(1.5 * _vmem_footprint(tn, Cp, Hp))))

    single_buf = pl.Buffered(1)                     # constant index map -> 1 buffer

    out = pl.pallas_call(
        mixer_kernel,
        out_shape=jax.ShapeDtypeStruct((B, Np, Cp), jnp.float32),
        grid=(B, NT),
        in_specs=[
            pl.BlockSpec((None, tn, Cp), lambda b, i: (b, i, 0)),      # x tile
            pl.BlockSpec((None, 2, Cp), lambda b, i: (b, 0, 0)),       # scale/shift
            pl.BlockSpec((Cp, Hp), lambda b, i: (0, 0),
                         pipeline_mode=single_buf),                    # w1 (resident)
            pl.BlockSpec((1, Hp), lambda b, i: (0, 0),
                         pipeline_mode=single_buf),                    # b1 (resident)
            pl.BlockSpec((Hp, Cp), lambda b, i: (0, 0),
                         pipeline_mode=single_buf),                    # w2 (resident)
            pl.BlockSpec((1, Cp), lambda b, i: (0, 0),
                         pipeline_mode=single_buf),                    # b2 (resident)
        ],
        out_specs=pl.BlockSpec((None, tn, Cp), lambda b, i: (b, i, 0)),
        # In-place reuse of the padded temp (always free); in the aligned path
        # aliasing only pays off when the caller donates x, so skip by default.
        input_output_aliases={0: 0} if needs_pad else {},
        compiler_params=pltpu.CompilerParams(
            dimension_semantics=("parallel", "parallel"),
            vmem_limit_bytes=vmem_limit,
        ),
        cost_estimate=cost,
    )(x_in, ss, prepared["w1"], prepared["b1"], prepared["w2"], prepared["b2"])

    return out[:, :N, :C] if needs_pad else out


def init_params(key, in_channel, layer, num_classes):
    """Deterministic synthetic parameter init (shapes per MLPCBNMixer)."""
    k1, k2, k3, k4 = jax.random.split(key, 4)
    # nn.Linear(in_channel, layer) weight is [layer, in_channel] in PyTorch;
    # stored pre-transposed as [in_channel, layer] so the kernel does h @ W1.
    w1 = jax.random.normal(k1, (in_channel, layer), jnp.float32) * 0.02
    b1 = jnp.zeros((layer,), jnp.float32)
    w2 = jax.random.normal(k2, (layer, in_channel), jnp.float32) * 0.02
    b2 = jnp.zeros((in_channel,), jnp.float32)
    # Conditional-BN class embeddings: gamma ~ 1, beta ~ 0 (perturbed so the
    # conditional path is exercised).
    gamma_emb = 1.0 + 0.1 * jax.random.normal(k3, (num_classes, in_channel), jnp.float32)
    beta_emb = 0.1 * jax.random.normal(k4, (num_classes, in_channel), jnp.float32)
    return dict(w1=w1, b1=b1, w2=w2, b2=b2, gamma_emb=gamma_emb, beta_emb=beta_emb)


def prepare_params(params):
    """One-time lane-pad + bf16 cast of the matmul operands.

    Doing this once (outside the per-step call) removes a full HBM read of the
    f32 weights plus a write of the bf16 copy from every invocation.
    """
    C, H = params["w1"].shape
    Cp, Hp = _round_up(C, LANE), _round_up(H, LANE)
    pc, ph = Cp - C, Hp - H
    return dict(
        w1=jnp.pad(params["w1"], ((0, pc), (0, ph))).astype(jnp.bfloat16),
        b1=jnp.pad(params["b1"], (0, ph)).reshape(1, Hp).astype(jnp.bfloat16),
        w2=jnp.pad(params["w2"], ((0, ph), (0, pc))).astype(jnp.bfloat16),
        b2=jnp.pad(params["b2"], (0, pc)).reshape(1, Cp),
        gamma_emb=jnp.pad(params["gamma_emb"], ((0, 0), (0, pc))),
        beta_emb=jnp.pad(params["beta_emb"], ((0, 0), (0, pc))),
    )


def _reference(x, label, params):
    """Pure-JAX f32 reference of the same forward semantics."""
    mean = jnp.mean(x, axis=(0, 1))
    var = jnp.mean(jnp.square(x - mean), axis=(0, 1))
    xn = (x - mean) * jax.lax.rsqrt(var + BN_EPS)
    g = params["gamma_emb"][label][:, None, :]
    b = params["beta_emb"][label][:, None, :]
    h = xn * g + b
    h1 = jax.nn.gelu(h @ params["w1"] + params["b1"], approximate=True)
    return x + (h1 @ params["w2"] + params["b2"])


if __name__ == "__main__":
    key = jax.random.PRNGKey(0)
    kx, kl, kp = jax.random.split(key, 3)

    B, N, C, H, NUM_CLASSES = 2, 8, 32, 64, 10   # in_channel=C=32, layer=H=64

    x = jax.random.normal(kx, (B, N, C), dtype=jnp.float32)
    label = jax.random.randint(kl, (B,), 0, NUM_CLASSES, dtype=jnp.int32)
    params = init_params(kp, C, H, NUM_CLASSES)
    prepared = prepare_params(params)            # one-time pad + bf16 cast

    out = jax.jit(mlp_layer_block)(x, label, prepared)
    jax.block_until_ready(out)

    assert out.shape == (B, N, C) and out.dtype == jnp.float32
    assert bool(jnp.all(jnp.isfinite(out)))
    ref = _reference(x, label, params)
    max_err = float(jnp.max(jnp.abs(out - ref)))
    assert max_err < 5e-2, max_err                # bf16 matmul / gelu tolerance
    print("KERNEL_OK")
</pallas_src>

<mosaic_0001>
module attributes {stable_mosaic.version = 11 : i64} {
  func.func @mixer_kernel(%arg0: i32, %arg1: i32, %arg2: memref<1x8x128xf32, #tpu.memory_space<vmem>>, %arg3: memref<1x2x128xf32, #tpu.memory_space<vmem>>, %arg4: memref<128x128xbf16, #tpu.memory_space<vmem>>, %arg5: memref<1x128xbf16, #tpu.memory_space<vmem>>, %arg6: memref<128x128xbf16, #tpu.memory_space<vmem>>, %arg7: memref<1x128xf32, #tpu.memory_space<vmem>>, %arg8: memref<1x8x128xf32, #tpu.memory_space<vmem>>) attributes {dimension_semantics = [#tpu.dimension_semantics<parallel>, #tpu.dimension_semantics<parallel>], iteration_bounds = array<i64: 2, 1>, scalar_prefetch = 0 : i64, scratch_operands = 0 : i64, tpu.core_type = #tpu.core_type<tc>, window_params = [{transform_indices = @transform_0, window_bounds = array<i64: 1, 8, 128>}, {transform_indices = @transform_1, window_bounds = array<i64: 1, 2, 128>}, {pipeline_mode = #tpu.pipeline_mode<synchronous>, transform_indices = @transform_2, window_bounds = array<i64: 128, 128>}, {pipeline_mode = #tpu.pipeline_mode<synchronous>, transform_indices = @transform_3, window_bounds = array<i64: 1, 128>}, {pipeline_mode = #tpu.pipeline_mode<synchronous>, transform_indices = @transform_4, window_bounds = array<i64: 128, 128>}, {pipeline_mode = #tpu.pipeline_mode<synchronous>, transform_indices = @transform_5, window_bounds = array<i64: 1, 128>}, {transform_indices = @transform_6, window_bounds = array<i64: 1, 8, 128>}]} {
    %c0 = arith.constant 0 : index
    %c0_0 = arith.constant 0 : index
    %c0_1 = arith.constant 0 : index
    %0 = vector.load %arg2[%c0, %c0_0, %c0_1] : memref<1x8x128xf32, #tpu.memory_space<vmem>>, vector<1x8x128xf32>
    %1 = vector.shape_cast %0 : vector<1x8x128xf32> to vector<8x128xf32>
    %c0_2 = arith.constant 0 : index
    %c0_3 = arith.constant 0 : index
    %c0_4 = arith.constant 0 : index
    %2 = vector.load %arg3[%c0_2, %c0_3, %c0_4] : memref<1x2x128xf32, #tpu.memory_space<vmem>>, vector<1x1x128xf32>
    %3 = vector.shape_cast %2 : vector<1x1x128xf32> to vector<1x128xf32>
    %c0_5 = arith.constant 0 : index
    %c1 = arith.constant 1 : index
    %c0_6 = arith.constant 0 : index
    %4 = vector.load %arg3[%c0_5, %c1, %c0_6] : memref<1x2x128xf32, #tpu.memory_space<vmem>>, vector<1x1x128xf32>
    %5 = vector.shape_cast %4 : vector<1x1x128xf32> to vector<1x128xf32>
    %6 = vector.broadcast %3 : vector<1x128xf32> to vector<8x128xf32>
    %7 = arith.mulf %1, %6 : vector<8x128xf32>
    %8 = vector.broadcast %5 : vector<1x128xf32> to vector<8x128xf32>
    %9 = arith.addf %7, %8 : vector<8x128xf32>
    %10 = arith.truncf %9 : vector<8x128xf32> to vector<8x128xbf16>
    %c0_7 = arith.constant 0 : index
    %c0_8 = arith.constant 0 : index
    %11 = vector.load %arg4[%c0_7, %c0_8] : memref<128x128xbf16, #tpu.memory_space<vmem>>, vector<128x128xbf16>
    %cst = arith.constant dense<0.000000e+00> : vector<8x128xf32>
    %12 = tpu.matmul %10, %11, %cst {dimension_numbers = #tpu.dot_dimension_numbers<[1], [0], [0], [1], [0, 0, 1, 1], [], []>} : vector<8x128xbf16>, vector<128x128xbf16>, vector<8x128xf32> -> vector<8x128xf32>
    %13 = arith.truncf %12 : vector<8x128xf32> to vector<8x128xbf16>
    %c0_9 = arith.constant 0 : index
    %c0_10 = arith.constant 0 : index
    %14 = vector.load %arg5[%c0_9, %c0_10] : memref<1x128xbf16, #tpu.memory_space<vmem>>, vector<1x128xbf16>
    %15 = vector.broadcast %14 : vector<1x128xbf16> to vector<8x128xbf16>
    %16 = arith.addf %13, %15 : vector<8x128xbf16>
    %17 = arith.mulf %16, %16 : vector<8x128xbf16>
    %18 = arith.mulf %16, %17 : vector<8x128xbf16>
    %cst_11 = arith.constant 4.467770e-02 : bf16
    %19 = vector.broadcast %cst_11 : bf16 to vector<8x128xbf16>
    %20 = arith.mulf %19, %18 : vector<8x128xbf16>
    %21 = arith.addf %16, %20 : vector<8x128xbf16>
    %cst_12 = arith.constant 7.968750e-01 : bf16
    %22 = vector.broadcast %cst_12 : bf16 to vector<8x128xbf16>
    %23 = arith.mulf %22, %21 : vector<8x128xbf16>
    %24 = math.tanh %23 : vector<8x128xbf16>
    %cst_13 = arith.constant 1.000000e+00 : bf16
    %25 = vector.broadcast %cst_13 : bf16 to vector<8x128xbf16>
    %26 = arith.addf %25, %24 : vector<8x128xbf16>
    %cst_14 = arith.constant 5.000000e-01 : bf16
    %27 = vector.broadcast %cst_14 : bf16 to vector<8x128xbf16>
    %28 = arith.mulf %27, %26 : vector<8x128xbf16>
    %29 = arith.mulf %16, %28 : vector<8x128xbf16>
    %c0_15 = arith.constant 0 : index
    %c0_16 = arith.constant 0 : index
    %30 = vector.load %arg6[%c0_15, %c0_16] : memref<128x128xbf16, #tpu.memory_space<vmem>>, vector<128x128xbf16>
    %cst_17 = arith.constant dense<0.000000e+00> : vector<8x128xf32>
    %31 = tpu.matmul %29, %30, %cst_17 {dimension_numbers = #tpu.dot_dimension_numbers<[1], [0], [0], [1], [0, 0, 1, 1], [], []>} : vector<8x128xbf16>, vector<128x128xbf16>, vector<8x128xf32> -> vector<8x128xf32>
    %c0_18 = arith.constant 0 : index
    %c0_19 = arith.constant 0 : index
    %32 = vector.load %arg7[%c0_18, %c0_19] : memref<1x128xf32, #tpu.memory_space<vmem>>, vector<1x128xf32>
    %33 = vector.broadcast %32 : vector<1x128xf32> to vector<8x128xf32>
    %34 = arith.addf %31, %33 : vector<8x128xf32>
    %35 = arith.addf %1, %34 : vector<8x128xf32>
    %c0_20 = arith.constant 0 : index
    %c0_21 = arith.constant 0 : index
    %c0_22 = arith.constant 0 : index
    %36 = vector.load %arg8[%c0_20, %c0_21, %c0_22] : memref<1x8x128xf32, #tpu.memory_space<vmem>>, vector<1x8x128xf32>
    %37 = vector.shape_cast %36 : vector<1x8x128xf32> to vector<8x128xf32>
    %38 = vector.shape_cast %35 : vector<8x128xf32> to vector<1x8x128xf32>
    tpu.vector_store %arg8[%c0_20, %c0_21, %c0_22], %38 {strides = array<i32>} : memref<1x8x128xf32, #tpu.memory_space<vmem>>, vector<1x8x128xf32>,
    return
  }
  func.func @transform_0(%arg0: i32, %arg1: i32) -> (i32, i32, i32) {
    %c0_i32 = arith.constant 0 : i32
    %c0_i32_0 = arith.constant 0 : i32
    return %arg0, %arg1, %c0_i32 : i32, i32, i32
  }
  func.func @transform_1(%arg0: i32, %arg1: i32) -> (i32, i32, i32) {
    %c0_i32 = arith.constant 0 : i32
    %c0_i32_0 = arith.constant 0 : i32
    %c0_i32_1 = arith.constant 0 : i32
    return %arg0, %c0_i32, %c0_i32_0 : i32, i32, i32
  }
  func.func @transform_2(%arg0: i32, %arg1: i32) -> (i32, i32) {
    %c0_i32 = arith.constant 0 : i32
    %c0_i32_0 = arith.constant 0 : i32
    %c0_i32_1 = arith.constant 0 : i32
    return %c0_i32, %c0_i32_0 : i32, i32
  }
  func.func @transform_3(%arg0: i32, %arg1: i32) -> (i32, i32) {
    %c0_i32 = arith.constant 0 : i32
    %c0_i32_0 = arith.constant 0 : i32
    %c0_i32_1 = arith.constant 0 : i32
    return %c0_i32, %c0_i32_0 : i32, i32
  }
  func.func @transform_4(%arg0: i32, %arg1: i32) -> (i32, i32) {
    %c0_i32 = arith.constant 0 : i32
    %c0_i32_0 = arith.constant 0 : i32
    %c0_i32_1 = arith.constant 0 : i32
    return %c0_i32, %c0_i32_0 : i32, i32
  }
  func.func @transform_5(%arg0: i32, %arg1: i32) -> (i32, i32) {
    %c0_i32 = arith.constant 0 : i32
    %c0_i32_0 = arith.constant 0 : i32
    %c0_i32_1 = arith.constant 0 : i32
    return %c0_i32, %c0_i32_0 : i32, i32
  }
  func.func @transform_6(%arg0: i32, %arg1: i32) -> (i32, i32, i32) {
    %c0_i32 = arith.constant 0 : i32
    %c0_i32_0 = arith.constant 0 : i32
    return %arg0, %arg1, %c0_i32 : i32, i32, i32
  }
}

</mosaic_0001>

<bundles_post_ra>
// kernel: mlp_layer_block.1
= control target key start
LH: loop header
LB: loop body
LE: loop exit
PB: predicated region body
PF: predicated region fallthrough
CT: control target
= control target key end

     0   :  { %11 = vsyncpa [#allocation3], 0  ;;  %s898_s21 = smov 0   ;;  %s900_s22 = smov 0   ;;  %s1023_s0 = inlined_call_operand.vmem [shape: f32[2,8,128], index: 0, kind: input, shape index: {}, may-alias: {0,6}]   ;;  %s1024_s1 = inlined_call_operand.vmem [shape: f32[2,2,128], index: 1, kind: input, shape index: {}]   ;;  %s1025_s2 = inlined_call_operand.vmem [shape: bf16[128,128], index: 2, kind: input, shape index: {}]   ;;  %s1026_s3 = inlined_call_operand.hbm [shape: bf16[1,128], index: 3, kind: input, shape index: {}]   ;;  %s1027_s4 = inlined_call_operand.vmem [shape: bf16[128,128], index: 4, kind: input, shape index: {}]   ;;  %s1028_s5 = inlined_call_operand.vmem [shape: f32[1,128], index: 5, kind: input, shape index: {}]   ;;  %s1029_s6 = inlined_call_operand.vmem [shape: f32[2,8,128], index: 6, kind: output, shape index: {}, may-alias: {0,6}]  }
   0x1   :  { %s902_s23 = smov 0  }
   0x2 LB: > { %s662_s24 = sadd.s32 4294967295, %s858_s23   ;;  %s29_s25 = sadd.s32 1, %s854_s22  ;;  %s858_s23 = sphi %s902_s23, %s17_s23   ;;  %s854_s22 = sphi %s900_s22, %s1033_s22   ;;  %s850_s21 = sphi %s898_s21, %s1032_s21  }
   0x3   : > { %p31_p0 = scmp.ge.s32.totalorder %s29_s25, 2  ;;  %p664_p1 = scmp.ge.s32.totalorder %s858_s23, 1 }
   0x4   : > { %p200_p2 = scmp.lt.s32.totalorder %s858_s23, 3  ;;  %p923_p4 = scmp.eq.s32.totalorder %s662_s24, 0 }
   0x5   : > { %s1035_s25 = smov (%p31_p0, %s29_s25), 0  ;;  %s860_s28 = smov [#allocation2]  }
   0x6   : > { %p919_p3 = pnand %p664_p1, %p200_p2  ;;  %s216_s29 = sshll.u32 %s860_s28, 4  ;;  %s217_s29 = int_to_ptr.vmem [resolvable:$true] %s216_s29 }
   0x7   : > { %s817_s30 = scalar_lea.vmem %s217_s29, 16  ;;  %s824_s7 = scalar_lea.vmem %s217_s29, 32 }
   0x8   : > { %p755_p5 = pneg %p919_p3  ;;  %p818_p8 = scmp.ne.s32.totalorder %s217_s29, %s817_s30 }
   0x9   : > { %p825_p11 = scmp.lt.s32.totalorder %s217_s29, %s217_s29  ;;  %p826_p12 = scmp.lt.s32.totalorder %s824_s7, %s817_s30 }
   0xa   : > { %p756_p6 = pnand %p923_p4, %p755_p5 }
   0xb   : > { %p827_p13 = por %p826_p12, %p825_p11 }
   0xc   : > { %p808_p7 = pneg %p756_p6 }
   0xe   : > { %p820_p9 = pnand %p818_p8, %p808_p7 }
  0x10   : > { %p821_p10 = pneg %p820_p9 }
  0x12   : > { %p828_p0 = pnand %p827_p13, %p821_p10 }
  0x14   : > { %831 = shalt.err (!%p828_p0)
}
  0x15   : > { %758 = dma.hbm_to_vmem [thread:$0]  (!%p756_p6), %s1026_s3, 16, %s217_s29, [#allocation3]  }
  0x16   : > { %252 = sbr.rel (%p919_p3) target bundleno = 489 (0x1e9), region = 44 }
  0x1b   : > { %845 = dma.done.wait (%p923_p4), [#allocation3], 16  }
  0x1c   : > { %847 = vsyncadd (%p923_p4), [#allocation3], 4294967280  ;;  %v861_v0 = vmov 0.0   ;;  %vm862_vm0 = vmmov 0   ;;  %v788_v1 = vld [vmem:[%s1025_s2 + $0x38] sm:$0xff]   ;;  %p290_p1 = scmp.lt.s32.totalorder %s850_s21, 1  ;;  %v436_v23 = vlaneseq }
  0x1d   : > { %711 = vmatprep.subr.bf16.mxu0 %v861_v0  ;;  %727 = vmatprep.mubr.msk.bf16.mxu0 %vm862_vm0, %v861_v0  ;;  %v789_v2 = vld [vmem:[%s1025_s2 + $0x30] sm:$0xff]   ;;  %v790_v3 = vld [vmem:[%s1025_s2 + $0x28] sm:$0xff]   ;;  %v791_v4 = vld [vmem:[%s1025_s2 + $0x20] sm:$0xff]  }
  0x1e   : > { %731 = vmatprep.subr.bf16.mxu1 %v861_v0  ;;  %747 = vmatprep.mubr.msk.bf16.mxu1 %vm862_vm0, %v861_v0  ;;  %s1037_s21 = smov (!%p290_p1, %s850_s21), 1  ;;  %v792_v5 = vld [vmem:[%s1025_s2 + $0x18] sm:$0xff]   ;;  %v793_v6 = vld [vmem:[%s1025_s2 + $0x10] sm:$0xff]   ;;  %v794_v10 = vld [vmem:[%s1025_s2 + $0x8] sm:$0xff]   ;;  %v437_v24 = vshrl.u32 %v436_v23, 7 }
  0x1f   : > { %712 = vmatpush3.bf16.msra.mxu0 %v788_v1  ;;  %s669_s18 = sshll.u32 %s1037_s21, 3  ;;  %s670_s19 = sshll.u32 %s1037_s21, 1  ;;  %v795_v13 = vld [vmem:[%s1025_s2] sm:$0xff]   ;;  %v796_v15 = vld [vmem:[%s1027_s4 + $0x38] sm:$0xff]   ;;  %v797_v16 = vld [vmem:[%s1027_s4 + $0x30] sm:$0xff]  }
  0x20   : > { %713 = vmatprep.subr.bf16.mxu0 %v861_v0  ;;  %s296_s28 = scalar_lea.vmem %s1023_s0, %s669_s18  ;;  %s300_s7 = scalar_lea.vmem %s1024_s1, %s670_s19  ;;  %732 = vmatpush3.bf16.msra.mxu1 %v796_v15  ;;  %v798_v17 = vld [vmem:[%s1027_s4 + $0x28] sm:$0xff]   ;;  %v799_v18 = vld [vmem:[%s1027_s4 + $0x20] sm:$0xff]   ;;  %v800_v19 = vld [vmem:[%s1027_s4 + $0x18] sm:$0xff]   ;;  %v438_v27 = vsub.s32 0, %v437_v24 }
  0x21   : > { %v972_v7 = vld [vmem:[%s296_s28] sm:$0xff]  ;;  %733 = vmatprep.subr.bf16.mxu1 %v861_v0  ;;  %v801_v20 = vld [vmem:[%s1027_s4 + $0x10] sm:$0xff]   ;;  %v802_v21 = vld [vmem:[%s1027_s4 + $0x8] sm:$0xff]   ;;  %s307_s15 = scalar_lea.vmem %s1029_s6, %s669_s18 }
  0x22   : > { %v672_v8 = vld [vmem:[%s300_s7] ss:$0 sm:$0xff]  ;;  %v673_v11 = vld [vmem:[%s300_s7 + $0x1] ss:$0 sm:$0xff] }
  0x23   : > { %714 = vmatpush3.bf16.msra.mxu0 %v789_v2  ;;  %v320_v9 = vmul.f32 %v672_v8, %v972_v7  ;;  %v803_v22 = vld [vmem:[%s1027_s4] sm:$0xff]  }
  0x24   : > { %715 = vmatprep.subr.bf16.mxu0 %v861_v0  ;;  %734 = vmatpush3.bf16.msra.mxu1 %v797_v16  ;;  %v432_v25 = vld [vmem:[#allocation2] sm:$0x1] }
  0x25   : > { %v325_v12 = vadd.f32 %v673_v11, %v320_v9  ;;  %735 = vmatprep.subr.bf16.mxu1 %v861_v0  ;;  %v434_v26 = vpack.i.b16 %v432_v25, %v432_v25  ;;  %v682_v44 = vld [vmem:[%s1028_s5] ss:$0 sm:$0xff] }
  0x27   : > { %716 = vmatpush3.bf16.msra.mxu0 %v790_v3  ;;  %v326_v14 = vpack.c.bf16 %v325_v12, %v325_v12  ;;  %v439_v28 = vrot.slane %v434_v26, %v438_v27 }
  0x28   : > { %717 = vmatprep.subr.bf16.mxu0 %v861_v0  ;;  %736 = vmatpush3.bf16.msra.mxu1 %v798_v17 }
  0x29   : > { %737 = vmatprep.subr.bf16.mxu1 %v861_v0 }
  0x2b   : > { %718 = vmatpush3.bf16.msra.mxu0 %v791_v4 }
  0x2c   : > { %719 = vmatprep.subr.bf16.mxu0 %v861_v0  ;;  %738 = vmatpush3.bf16.msra.mxu1 %v799_v18 }
  0x2d   : > { %739 = vmatprep.subr.bf16.mxu1 %v861_v0 }
  0x2f   : > { %720 = vmatpush3.bf16.msra.mxu0 %v792_v5 }
  0x30   : > { %721 = vmatprep.subr.bf16.mxu0 %v861_v0  ;;  %740 = vmatpush3.bf16.msra.mxu1 %v800_v19 }
  0x31   : > { %741 = vmatprep.subr.bf16.mxu1 %v861_v0 }
  0x33   : > { %722 = vmatpush3.bf16.msra.mxu0 %v793_v6 }
  0x34   : > { %723 = vmatprep.subr.bf16.mxu0 %v861_v0  ;;  %742 = vmatpush3.bf16.msra.mxu1 %v801_v20 }
  0x35   : > { %743 = vmatprep.subr.bf16.mxu1 %v861_v0 }
  0x37   : > { %724 = vmatpush3.bf16.msra.mxu0 %v794_v10 }
  0x38   : > { %725 = vmatprep.subr.bf16.mxu0 %v861_v0  ;;  %744 = vmatpush3.bf16.msra.mxu1 %v802_v21 }
  0x39   : > { %745 = vmatprep.subr.bf16.mxu1 %v861_v0 }
  0x3b   : > { %726 = vmatpush3.bf16.msra.mxu0 %v795_v13 }
  0x3c   : > { %746 = vmatpush3.bf16.msra.mxu1 %v803_v22 }
  0x3e   : > { %728 = vmatmul.mubr.bf16.vlgmr.msra.gmra.mxu0 %v326_v14 }
  0xfe   : > { %v425_v29 = vpop.f32.mrf.mxu0 }
  0xff   : > { %v431_v30 = vpack.c.bf16 %v425_v29, %v425_v29 }
 0x100   : > { %v729_v31 = vpop.f32.mrf.mxu0 }
 0x101   : > { %v440_v32 = vadd.bf16 %v439_v28, %v431_v30 }
 0x102   : > { %v428_v33 = vpop.f32.mrf.mxu0 }
 0x103   : > { %v441_v34 = vmul.bf16 %v440_v32, %v440_v32 }
 0x104   : > { %v730_v35 = vpop.f32.mrf.mxu0 }
 0x105   : > { %v442_v36 = vmul.bf16 %v441_v34, %v440_v32 }
 0x107   : > { %v443_v37 = vmul.bf16 1027030327, %v442_v36 }
 0x109   : > { %v444_v38 = vadd.bf16 %v443_v37, %v440_v32 }
 0x10b   : > { %v445_v39 = vmul.bf16 1061961548, %v444_v38 }
 0x10d   : > { %804 = vtanh.bf16 %v445_v39 }
 0x11b   : > { %v805_v40 = vpop.eup %804 }
 0x11c   : > { %v447_v41 = vadd.bf16 1065369472, %v805_v40 }
 0x11e   : > { %v448_v42 = vmul.bf16 1056980736, %v447_v41 }
 0x120   : > { %v449_v43 = vmul.bf16 %v448_v42, %v440_v32 }
 0x122   : > { %748 = vmatmul.mubr.bf16.vlgmr.msra.gmra.mxu1 %v449_v43 }
 0x1e2   : > { %v555_v45 = vpop.f32.mrf.mxu1 }
 0x1e3   : > { %v556_v46 = vadd.f32 %v682_v44, %v555_v45 }
 0x1e4   : > { %v749_v47 = vpop.f32.mrf.mxu1 }
 0x1e5   : > { %v561_v48 = vadd.f32 %v556_v46, %v972_v7 }
 0x1e6   : > { %v558_v49 = vpop.f32.mrf.mxu1 }
 0x1e7   : > { %562 = vst [vmem:[%s307_s15] sm:$0xff] %v561_v48 }
 0x1e8   : > { %v750_v50 = vpop.f32.mrf.mxu1 }
 0x1e9 PF: > { %s17_s23 = sadd.s32 1, %s858_s23   ;;  %s1032_s21 = smov %s854_s22 }
 0x1ea   : > { %p14_p2 = scmp.ge.s32.totalorder %s17_s23, 4   ;;  %s1033_s22 = smov %s1035_s25 }
 0x1ec   :  { %16 = sbr.rel (!%p14_p2) target bundleno = 2 (0x2), region = 82 }
 0x1f1   :  { %588 = vsyncpa [#allocation3], 1 }
 0x1f2   :  { %590 = vsyncpa [#allocation3 + $0x1], 1 }

</bundles_post_ra>
